<compile_context>
chip_gen: v6e
topology: v6e:2x2x1
jax: 0.10.0
libtpu: 0.0.40
codegen_flags: <defaults>
</compile_context>

<pallas_src>
import jax
import jax.numpy as jnp
from jax.experimental import pallas as pl
from jax.experimental.pallas import tpu as pltpu


def _exp_kernel(x_ref, o_ref):
    # Elementwise exp on the whole VMEM tile (EUP path, trivially HBM-bound).
    o_ref[...] = jnp.exp(x_ref[...])


_LANE_CHOICES = (1024, 512, 256, 128)
# ~2 MiB per block; real VMEM cost ~4x (input + output, each double-buffered)
# = ~8 MiB, comfortably under every generation's scoped-VMEM default.
_BLOCK_BYTE_BUDGET = 2 * 1024 * 1024


def _run_exp_2d(x2: jax.Array) -> jax.Array:
    """exp over a 2D [rows, cols] slab with a 1D parallel grid over rows."""
    rows, cols = x2.shape
    itemsize = x2.dtype.itemsize

    # Sublane packing: 8 rows/vreg for 32-bit, 16 for 16-bit, 32 for 8-bit.
    sublane = max(8, 32 // max(itemsize, 1))

    budget_rows = max(sublane, _BLOCK_BYTE_BUDGET // max(cols * itemsize, 1))
    if budget_rows >= rows:
        tr = rows  # single block along rows (full-extent dim is always legal)
    else:
        tr = max(sublane, (budget_rows // sublane) * sublane)

    # Partial last block (if rows % tr != 0) is handled by Pallas: reads of the
    # overhang are padded, OOB writes are masked -> no jnp.pad / slice needed.
    grid = (pl.cdiv(rows, tr),)

    total = rows * cols
    return pl.pallas_call(
        _exp_kernel,
        out_shape=jax.ShapeDtypeStruct((rows, cols), x2.dtype),
        grid_spec=pltpu.PrefetchScalarGridSpec(
            num_scalar_prefetch=0,
            grid=grid,
            in_specs=[pl.BlockSpec((tr, cols), lambda i: (i, 0))],
            out_specs=pl.BlockSpec((tr, cols), lambda i: (i, 0)),
        ),
        compiler_params=pltpu.CompilerParams(
            dimension_semantics=("parallel",),  # megacore sharding on v7x
        ),
        cost_estimate=pl.CostEstimate(
            flops=0,
            transcendentals=total,
            bytes_accessed=2 * total * itemsize,
        ),
    )(x2)


def exponential_activation(x: jax.Array) -> jax.Array:
    """exp(x) computed in a Pallas TPU kernel. Matches torch.exp semantics."""
    orig_shape = x.shape

    # torch.exp promotes integer/bool inputs to floating point; mirror that.
    if not jnp.issubdtype(x.dtype, jnp.floating):
        x = x.astype(jnp.float32)

    total = x.size
    if total == 0:
        # Empty tensor: nothing to compute.
        return jnp.zeros(orig_shape, x.dtype)

    flat = x.reshape(-1)
    itemsize = x.dtype.itemsize

    # Preferred path: lane-dense 2D view, widest lane count that divides size.
    lanes = next((l for l in _LANE_CHOICES if total % l == 0), None)
    if lanes is not None:
        out = _run_exp_2d(flat.reshape(total // lanes, lanes))
        return out.reshape(orig_shape)

    # Size not a multiple of 128.
    if total * itemsize <= _BLOCK_BYTE_BUDGET:
        # Small: process as a single full-extent block, no padding passes.
        out = _run_exp_2d(flat.reshape(1, total))
        return out.reshape(orig_shape)

    # Rare large ragged case: pad the flat vector once to a lane multiple.
    lanes = 1024
    pad = (-total) % lanes
    padded = jnp.pad(flat, (0, pad))
    out = _run_exp_2d(padded.reshape((total + pad) // lanes, lanes))
    return out.reshape(-1)[:total].reshape(orig_shape)


if __name__ == "__main__":
    key = jax.random.PRNGKey(0)

    # NCHW-like input consistent with typical usage of the module.
    x = jax.random.normal(key, (2, 4, 16, 16), dtype=jnp.float32)
    y = jax.block_until_ready(exponential_activation(x))
    y_ref = jnp.exp(x)
    assert y.shape == x.shape and y.dtype == x.dtype
    assert jnp.allclose(y, y_ref, rtol=1e-6, atol=1e-6), "mismatch vs jnp.exp (main)"

    # Ragged (non-multiple-of-128) shape exercises the full-extent fallback.
    x2 = jax.random.normal(jax.random.PRNGKey(1), (3, 5, 7), dtype=jnp.float32)
    y2 = jax.block_until_ready(exponential_activation(x2))
    assert jnp.allclose(y2, jnp.exp(x2), rtol=1e-6, atol=1e-6), "mismatch vs jnp.exp (ragged)"

    print("KERNEL_OK")
</pallas_src>

<mosaic_0001>
module attributes {stable_mosaic.version = 11 : i64} {
  func.func @_exp_kernel(%arg0: i32, %arg1: memref<2x1024xf32, #tpu.memory_space<vmem>>, %arg2: memref<2x1024xf32, #tpu.memory_space<vmem>>) attributes {dimension_semantics = [#tpu.dimension_semantics<parallel>], iteration_bounds = array<i64: 1>, scalar_prefetch = 0 : i64, scratch_operands = 0 : i64, tpu.core_type = #tpu.core_type<tc>, window_params = [{transform_indices = @transform_0, window_bounds = array<i64: 2, 1024>}, {transform_indices = @transform_1, window_bounds = array<i64: 2, 1024>}]} {
    %c0 = arith.constant 0 : index
    %c0_0 = arith.constant 0 : index
    %0 = vector.load %arg1[%c0, %c0_0] : memref<2x1024xf32, #tpu.memory_space<vmem>>, vector<2x1024xf32>
    %1 = math.exp %0 : vector<2x1024xf32>
    %c0_1 = arith.constant 0 : index
    %c0_2 = arith.constant 0 : index
    %2 = vector.load %arg2[%c0_1, %c0_2] : memref<2x1024xf32, #tpu.memory_space<vmem>>, vector<2x1024xf32>
    tpu.vector_store %arg2[%c0_1, %c0_2], %1 {strides = array<i32>} : memref<2x1024xf32, #tpu.memory_space<vmem>>, vector<2x1024xf32>,
    return
  }
  func.func @transform_0(%arg0: i32) -> (i32, i32) {
    %c0_i32 = arith.constant 0 : i32
    %c0_i32_0 = arith.constant 0 : i32
    return %arg0, %c0_i32 : i32, i32
  }
  func.func @transform_1(%arg0: i32) -> (i32, i32) {
    %c0_i32 = arith.constant 0 : i32
    %c0_i32_0 = arith.constant 0 : i32
    return %arg0, %c0_i32 : i32, i32
  }
}

</mosaic_0001>

<bundles_post_ra>
// kernel: tpu_custom_call.1
= control target key start
LH: loop header
LB: loop body
LE: loop exit
PB: predicated region body
PF: predicated region fallthrough
CT: control target
= control target key end

     0   :  { %6 = vsyncpa [#allocation3], 0  ;;  %s112_s0 = inlined_call_operand.hbm [shape: f32[2,1024], index: 0, kind: input, shape index: {}]   ;;  %s113_s1 = inlined_call_operand.hbm [shape: f32[2,1024], index: 1, kind: output, shape index: {}]  }
   0x1   :  { %7 = vsyncpa [#allocation4], 0  ;;  %s94_s6 = smov [#allocation2]  }
   0x2   :  { %s14_s7 = sshll.u32 %s94_s6, 4  ;;  %s15_s7 = int_to_ptr.vmem [resolvable:$true] %s14_s7 }
   0x3   :  { %s58_s8 = scalar_lea.vmem %s15_s7, 256  ;;  %p63_p1 = scmp.lt.s32.totalorder %s15_s7, %s15_s7 }
   0x4   :  { %p59_p0 = scmp.ne.s32.totalorder %s15_s7, %s58_s8  ;;  %p64_p2 = scmp.lt.s32.totalorder %s58_s8, %s58_s8 }
   0x6   :  { %p65_p3 = por %p64_p2, %p63_p1 }
   0x8   :  { %p66_p4 = pnand %p65_p3, %p59_p0 }
   0xa   :  { %69 = shalt.err (!%p66_p4)
}
   0xb   :  { %17 = dma.hbm_to_vmem [thread:$0]  %s112_s0, 256, %s15_s7, [#allocation3]  }
   0xc   :  { %90 = dma.done.wait [#allocation3], 256  }
   0xd   :  { %91 = vsyncadd [#allocation3], 4294967040  ;;  %v21_v0 = vld [vmem:[#allocation2] sm:$0xff]  ;;  %v22_v1 = vld [vmem:[#allocation2 + $0x8] sm:$0xff]  ;;  %s95_s11 = smov [#allocation5]  }
   0xe   :  { %v23_v2 = vmul.f32 1.442695, %v21_v0  ;;  %v25_v3 = vmul.f32 1.442695, %v22_v1  ;;  %s35_s12 = sshll.u32 %s95_s11, 4  ;;  %s36_s12 = int_to_ptr.vmem [resolvable:$true] %s35_s12 }
   0xf   :  { %s70_s13 = scalar_lea.vmem %s36_s12, 256  ;;  %p75_p6 = scmp.lt.s32.totalorder %s36_s12, %s36_s12 }
  0x10   :  { %46 = vpow2.f32 %v23_v2  ;;  %p71_p5 = scmp.ne.s32.totalorder %s36_s12, %s70_s13  ;;  %p76_p7 = scmp.lt.s32.totalorder %s70_s13, %s70_s13 }
  0x11   :  { %48 = vpow2.f32 %v25_v3 }
  0x12   :  { %p77_p8 = por %p76_p7, %p75_p6 }
  0x14   :  { %p78_p9 = pnand %p77_p8, %p71_p5 }
  0x1d   :  { %v47_v4 = vpop.eup %46 }
  0x1e   :  { %v49_v5 = vpop.eup %48  ;;  %27 = vst [vmem:[#allocation5] sm:$0xff] %v47_v4 }
  0x1f   :  { %28 = vst [vmem:[#allocation5 + $0x8] sm:$0xff] %v49_v5 }
  0x20   :  { %81 = shalt.err (!%p78_p9)
}
  0x21   :  { %38 = dma.vmem_to_hbm [thread:$0]  %s36_s12, 256, %s113_s1, [#allocation4]  }
  0x22   :  { %92 = dma.done.wait [#allocation4], 256  }
  0x23   :  { %93 = vsyncadd [#allocation4], 4294967040 }
  0x24   :  { %42 = vsyncpa [#allocation3], 1 }
  0x25   :  { %43 = vsyncpa [#allocation4], 1 }

</bundles_post_ra>
